<compile_context>
chip_gen: v5e
topology: v5e:2x2
jax: 0.10.0
libtpu: 0.0.40
codegen_flags: <defaults>
</compile_context>

<pallas_src>
from typing import Optional, Sequence

import numpy as np
import jax
import jax.numpy as jnp
from jax.experimental import pallas as pl
from jax.experimental.pallas import tpu as pltpu


# ------------------------------ Pallas kernel -------------------------------

def _ce_sum_kernel(logits_ref, tgt_ref, out_ref):
    """Per-row-tile sum of cross-entropy; rows with target < 0 are ignored.

    Writes the tile's partial sum broadcast into a lane-dense (8, 128) block
    (unmasked vst; the wrapper reads element [0, 0] of each tile's block).
    """
    logits = logits_ref[...].astype(jnp.float32)          # [T, C] (cast in VMEM)
    tgt = tgt_ref[...]                                     # [T, 1] int32, -1 = pad

    # Numerically stable CE; reuse `shifted` for both LSE and the target gather
    # (the row max cancels:  lse_full - logit[tgt] = lse_shift - shifted[tgt]).
    m = jnp.max(logits, axis=-1, keepdims=True)            # [T, 1]
    shifted = logits - m                                    # [T, C]
    lse = jnp.log(jnp.sum(jnp.exp(shifted), axis=-1, keepdims=True))   # [T, 1]

    col = jax.lax.broadcasted_iota(jnp.int32, shifted.shape, 1)
    tgt_shifted = jnp.sum(jnp.where(col == tgt, shifted, 0.0),
                          axis=-1, keepdims=True)           # [T, 1]

    per_row = lse - tgt_shifted                             # [T, 1]
    valid = (tgt >= 0).astype(jnp.float32)                  # mask padded rows
    tile_sum = jnp.sum(per_row * valid, keepdims=True)      # (1, 1)
    out_ref[...] = jnp.broadcast_to(tile_sum, (8, 128))


def _round_up(x: int, m: int) -> int:
    return ((x + m - 1) // m) * m


def _choose_row_tile(n_rows: int, n_classes: int, itemsize: int) -> int:
    """Row tile (multiple of 8) keeping double-buffered tiles well inside VMEM."""
    budget = 2 * 1024 * 1024                     # bytes per in-flight logits buffer
    t = budget // max(n_classes * itemsize, 1)
    t = max(8, min(512, (t // 8) * 8))
    return min(t, _round_up(n_rows, 8))


def _ce_sum_pallas(logits: jax.Array, target: jax.Array) -> jax.Array:
    """Pallas path: sum-reduced cross entropy; target < 0 rows are ignored."""
    n, c = logits.shape
    tile = _choose_row_tile(n, c, logits.dtype.itemsize)
    n_pad = _round_up(n, tile)

    tgt = target.astype(jnp.int32)
    if n_pad != n:
        logits = jnp.pad(logits, ((0, n_pad - n), (0, 0)))
        tgt = jnp.pad(tgt, (0, n_pad - n), constant_values=-1)
    tgt2d = tgt.reshape(n_pad, 1)
    num_tiles = n_pad // tile

    partials = pl.pallas_call(
        _ce_sum_kernel,
        out_shape=jax.ShapeDtypeStruct((num_tiles * 8, 128), jnp.float32),
        grid=(num_tiles,),
        in_specs=[
            pl.BlockSpec((tile, c), lambda i: (i, 0)),   # class axis full (lane)
            pl.BlockSpec((tile, 1), lambda i: (i, 0)),
        ],
        out_specs=pl.BlockSpec((8, 128), lambda i: (i, 0)),
        compiler_params=pltpu.CompilerParams(
            dimension_semantics=("parallel",),           # both TCs on v7x
            vmem_limit_bytes=32 * 1024 * 1024,
        ),
    )(logits, tgt2d)                                     # NOTE: native dtype in HBM

    # element [0,0] of each tile's (8,128) block carries that tile's partial sum
    return jnp.sum(partials.reshape(num_tiles, 8, 128)[:, 0, 0])


def _ce_sum_xla(logits: jax.Array, target: jax.Array) -> jax.Array:
    """Fused-XLA path for tiny clusters (a Pallas launch is pure overhead)."""
    logits = logits.astype(jnp.float32)
    tgt = target.astype(jnp.int32)
    m = jnp.max(logits, axis=-1, keepdims=True)
    shifted = logits - m
    lse = jnp.log(jnp.sum(jnp.exp(shifted), axis=-1))
    safe_tgt = jnp.clip(tgt, 0, logits.shape[1] - 1)
    tgt_shifted = jnp.take_along_axis(shifted, safe_tgt[:, None], axis=-1)[:, 0]
    per_row = lse - tgt_shifted
    valid = (tgt >= 0).astype(jnp.float32)
    return jnp.sum(per_row * valid)


_PALLAS_MIN_BYTES = 128 * 1024   # below this, XLA fusion beats kernel dispatch


def cross_entropy_sum(logits: jax.Array, target: jax.Array,
                      force_pallas: bool = False) -> jax.Array:
    """nn.CrossEntropyLoss(size_average=False); rows with target < 0 ignored."""
    n, c = logits.shape
    if force_pallas or (n * c * logits.dtype.itemsize >= _PALLAS_MIN_BYTES):
        return _ce_sum_pallas(logits, target)
    return _ce_sum_xla(logits, target)


# ------------------------------ module wrapper -------------------------------

class AdaptiveLossPallas:
    """JAX/Pallas port of utils/_nn.py::AdaptiveLoss forward."""

    def __init__(self, cutoffs: Sequence[int]):
        self.cutoffs = list(cutoffs)

    def remap_target(self, target: np.ndarray):
        # Data-dependent index bookkeeping stays host-side (numpy).
        target = np.asarray(target)
        new_target = [target.copy()]
        for i in range(len(self.cutoffs) - 1):
            mask = (target >= self.cutoffs[i]) & (target < self.cutoffs[i + 1])
            if mask.sum() > 0:
                new_target[0][mask] = self.cutoffs[0] + i
                new_target.append(target[mask] - self.cutoffs[i])
            else:
                new_target.append(None)
        return new_target

    def __call__(self, inp: Sequence[Optional[jax.Array]], target) -> jax.Array:
        n = inp[0].shape[0]
        targets = self.remap_target(np.asarray(target))
        loss = jnp.float32(0.0)
        for i in range(len(inp)):
            if inp[i] is None or targets[i] is None:
                continue
            t = np.asarray(targets[i], np.int32)
            # Strict upper bound (PyTorch CE would raise; `<= C` silently
            # inflates the loss through the one-hot gather).
            assert t.min() >= 0 and t.max() < inp[i].shape[1]
            if i == 0:
                # Head cluster: the hot path -> tiled Pallas kernel.
                loss = loss + cross_entropy_sum(jnp.asarray(inp[i]),
                                                jnp.asarray(t),
                                                force_pallas=True)
            else:
                # Tail clusters: pad to a static capacity (<= head batch) with
                # -1 sentinel targets so shapes are batch-independent.
                rows = inp[i].shape[0]
                cap = _round_up(n, 8)
                logits_i = jnp.pad(jnp.asarray(inp[i]),
                                   ((0, cap - rows), (0, 0)))
                tgt_i = jnp.asarray(np.pad(t, (0, cap - rows),
                                           constant_values=-1))
                loss = loss + cross_entropy_sum(logits_i, tgt_i)
        return loss / jnp.float32(n)


# ---------------------------- reference (numpy) ------------------------------

def _ref_ce_sum(logits: np.ndarray, tgt: np.ndarray) -> float:
    logits = np.asarray(logits, np.float32)
    m = logits.max(-1, keepdims=True)
    lse = np.log(np.exp(logits - m).sum(-1, keepdims=True)) + m
    rows = np.arange(len(tgt))
    return float((lse[rows, 0] - logits[rows, tgt]).sum())


def _ref_adaptive_loss(cutoffs, inp, target) -> float:
    target = np.asarray(target)
    new_target = [target.copy()]
    for i in range(len(cutoffs) - 1):
        mask = (target >= cutoffs[i]) & (target < cutoffs[i + 1])
        if mask.sum() > 0:
            new_target[0][mask] = cutoffs[0] + i
            new_target.append(target[mask] - cutoffs[i])
        else:
            new_target.append(None)
    n = inp[0].shape[0]
    loss = 0.0
    for i in range(len(inp)):
        if inp[i] is not None and new_target[i] is not None:
            loss += _ref_ce_sum(np.asarray(inp[i]), new_target[i])
    return loss / n


# --------------------------------- main ---------------------------------------

if __name__ == "__main__":
    key = jax.random.PRNGKey(0)
    cutoffs = [8, 16, 32]          # head covers classes [0,8), 2 tail clusters
    N = 16                         # head batch size

    k_tgt, k_head, k_t1, k_t2 = jax.random.split(key, 4)
    target = jax.random.randint(k_tgt, (N,), 0, cutoffs[-1], dtype=jnp.int32)
    target_np = np.asarray(target)

    # head logits: cutoffs[0] normal classes + one "pointer" class per tail cluster
    head_classes = cutoffs[0] + (len(cutoffs) - 1)
    inp = [jax.random.normal(k_head, (N, head_classes), jnp.float32)]

    # tail logits: only the rows whose targets fall in that cluster's range
    tail_keys = [k_t1, k_t2]
    for i in range(len(cutoffs) - 1):
        cnt = int(((target_np >= cutoffs[i]) & (target_np < cutoffs[i + 1])).sum())
        if cnt > 0:
            c = cutoffs[i + 1] - cutoffs[i]
            inp.append(jax.random.normal(tail_keys[i], (cnt, c), jnp.float32))
        else:
            inp.append(None)       # mirrors "inp[i] is None" branch in forward

    loss_mod = AdaptiveLossPallas(cutoffs)
    loss = jax.block_until_ready(loss_mod(inp, target_np))

    ref = _ref_adaptive_loss(cutoffs, inp, target_np)
    assert np.allclose(float(loss), ref, rtol=1e-5, atol=1e-5), (float(loss), ref)

    print("KERNEL_OK")
</pallas_src>

<mosaic_0001>
module attributes {stable_mosaic.version = 11 : i64} {
  func.func @_ce_sum_kernel(%arg0: i32, %arg1: memref<16x10xf32, #tpu.memory_space<vmem>>, %arg2: memref<16x1xi32, #tpu.memory_space<vmem>>, %arg3: memref<8x128xf32, #tpu.memory_space<vmem>>) attributes {dimension_semantics = [#tpu.dimension_semantics<parallel>], iteration_bounds = array<i64: 1>, scalar_prefetch = 0 : i64, scratch_operands = 0 : i64, tpu.core_type = #tpu.core_type<tc>, window_params = [{transform_indices = @transform_0, window_bounds = array<i64: 16, 10>}, {transform_indices = @transform_1, window_bounds = array<i64: 16, 1>}, {transform_indices = @transform_2, window_bounds = array<i64: 8, 128>}]} {
    %c0 = arith.constant 0 : index
    %c0_0 = arith.constant 0 : index
    %0 = vector.load %arg1[%c0, %c0_0] : memref<16x10xf32, #tpu.memory_space<vmem>>, vector<16x10xf32>
    %c0_1 = arith.constant 0 : index
    %c0_2 = arith.constant 0 : index
    %1 = vector.load %arg2[%c0_1, %c0_2] : memref<16x1xi32, #tpu.memory_space<vmem>>, vector<16x1xi32>
    %cst = arith.constant dense<0xFF800000> : vector<16xf32>
    %2 = vector.multi_reduction <maximumf>, %0, %cst [1] : vector<16x10xf32> to vector<16xf32>
    %3 = vector.shape_cast %2 : vector<16xf32> to vector<16x1xf32>
    %4 = vector.broadcast %3 : vector<16x1xf32> to vector<16x10xf32>
    %5 = arith.subf %0, %4 : vector<16x10xf32>
    %6 = math.exp %5 : vector<16x10xf32>
    %cst_3 = arith.constant dense<0.000000e+00> : vector<16xf32>
    %7 = vector.multi_reduction <add>, %6, %cst_3 [1] : vector<16x10xf32> to vector<16xf32>
    %8 = vector.shape_cast %7 : vector<16xf32> to vector<16x1xf32>
    %9 = math.log %8 : vector<16x1xf32>
    %10 = tpu.iota {dimensions = array<i32: 1>} : vector<16x10xi32>
    %11 = vector.broadcast %1 : vector<16x1xi32> to vector<16x10xi32>
    %12 = arith.cmpi eq, %10, %11 : vector<16x10xi32>
    %cst_4 = arith.constant 0.000000e+00 : f32
    %13 = vector.broadcast %cst_4 : f32 to vector<16x10xf32>
    %14 = arith.select %12, %5, %13 : vector<16x10xi1>, vector<16x10xf32>
    %cst_5 = arith.constant dense<0.000000e+00> : vector<16xf32>
    %15 = vector.multi_reduction <add>, %14, %cst_5 [1] : vector<16x10xf32> to vector<16xf32>
    %16 = vector.shape_cast %15 : vector<16xf32> to vector<16x1xf32>
    %17 = arith.subf %9, %16 : vector<16x1xf32>
    %c0_i32 = arith.constant 0 : i32
    %18 = vector.broadcast %c0_i32 : i32 to vector<16x1xi32>
    %19 = arith.cmpi sge, %1, %18 : vector<16x1xi32>
    %20 = arith.extui %19 : vector<16x1xi1> to vector<16x1xi32>
    %21 = arith.sitofp %20 : vector<16x1xi32> to vector<16x1xf32>
    %22 = arith.mulf %17, %21 : vector<16x1xf32>
    %23 = vector.shape_cast %22 : vector<16x1xf32> to vector<1x16x1xf32>
    %cst_6 = arith.constant dense<0.000000e+00> : vector<1xf32>
    %24 = vector.multi_reduction <add>, %23, %cst_6 [1, 2] : vector<1x16x1xf32> to vector<1xf32>
    %25 = vector.shape_cast %24 : vector<1xf32> to vector<1x1x1xf32>
    %26 = vector.extract %25[0, 0, 0] : f32 from vector<1x1x1xf32>
    %27 = vector.broadcast %26 : f32 to vector<1x1xf32>
    %28 = vector.shape_cast %27 : vector<1x1xf32> to vector<1x1xf32>
    %29 = vector.broadcast %28 : vector<1x1xf32> to vector<8x128xf32>
    %c0_7 = arith.constant 0 : index
    %c0_8 = arith.constant 0 : index
    %30 = vector.load %arg3[%c0_7, %c0_8] : memref<8x128xf32, #tpu.memory_space<vmem>>, vector<8x128xf32>
    tpu.vector_store %arg3[%c0_7, %c0_8], %29 {strides = array<i32>} : memref<8x128xf32, #tpu.memory_space<vmem>>, vector<8x128xf32>,
    return
  }
  func.func @transform_0(%arg0: i32) -> (i32, i32) {
    %c0_i32 = arith.constant 0 : i32
    %c0_i32_0 = arith.constant 0 : i32
    return %arg0, %c0_i32 : i32, i32
  }
  func.func @transform_1(%arg0: i32) -> (i32, i32) {
    %c0_i32 = arith.constant 0 : i32
    %c0_i32_0 = arith.constant 0 : i32
    return %arg0, %c0_i32 : i32, i32
  }
  func.func @transform_2(%arg0: i32) -> (i32, i32) {
    %c0_i32 = arith.constant 0 : i32
    %c0_i32_0 = arith.constant 0 : i32
    return %arg0, %c0_i32 : i32, i32
  }
}

</mosaic_0001>

<bundles_post_ra>
// kernel: tpu_custom_call.1
= control target key start
LH: loop header
LB: loop body
LE: loop exit
PB: predicated region body
PF: predicated region fallthrough
CT: control target
= control target key end

     0   :  { %vm16_vm0 = vcmask 80896   ;;  %v141_v3 = vmov 0   ;;  %s180_s0 = inlined_call_operand.vmem [shape: f32[16,10], index: 0, kind: input, shape index: {}]   ;;  %s181_s1 = inlined_call_operand.vmem [shape: s32[16,1], index: 1, kind: input, shape index: {}]   ;;  %s182_s2 = inlined_call_operand.hbm [shape: f32[8,128], index: 2, kind: output, shape index: {}]  }
   0x1   :  { %v12_v0 = vld [vmem:[%s180_s0] sm:$0xff]  ;;  %105 = vset.pattern.permute.xlu1 %v141_v3  ;;  %106 = vset.pattern.permute.xlu0 %v141_v3 }
   0x2   :  { %v14_v1 = vld [vmem:[%s181_s1] sm:$0xff]  ;;  %v17_v2 = vsel %vm16_vm0, %v12_v0, -inf }
   0x3   :  { %7 = vsyncpa [#allocation3], 0  ;;  %18 = vmax.xlane.f32.xlu0 %v17_v2  ;;  %42 = vperm.xlu1 %105, %v14_v1   ;;  %v13_v4 = vld [vmem:[%s180_s0 + $0x8] sm:$0xff]  ;;  %v39_v7 = vlaneseq  ;;  %vm59_vm3 = vcmp.ge.s32.totalorder %v14_v1, 0  ;;  %v142_v32 = vmov 0.0   ;;  %vm67_vm5 = vcmask 7168  }
   0x4   :  { %v20_v5 = vsel %vm16_vm0, %v13_v4, -inf  ;;  %v15_v6 = vld [vmem:[%s181_s1 + $0x8] sm:$0xff]  ;;  %v98_v33 = vsel %vm59_vm3, 1.0, %v142_v32  ;;  %s143_s0 = smov [#allocation2]   ;;  %s89_s19 = sshll.u32 %s182_s2, 4  ;;  %s90_s19 = int_to_ptr.hbm [resolvable:$true] %s89_s19 }
   0x5   :  { %v40_v8 = vand.u32 127, %v39_v7  ;;  %vm60_vm4 = vcmp.ge.s32.totalorder %v15_v6, 0  ;;  %s87_s1 = sshll.u32 %s143_s0, 4  ;;  %s88_s1 = int_to_ptr.vmem [resolvable:$true] %s87_s1 }
   0x6   :  { %v99_v35 = vsel %vm60_vm4, 1.0, %v142_v32 }
   0xb   :  { %21 = vmax.xlane.f32.xlu0 %v20_v5  ;;  %45 = vperm.xlu1 %105, %v15_v6  }
  0x75   :  { %v43_v9 = vpop.permute.xlu1 %42 }
  0x76   :  { %v19_v10 = vpop.xlane.xlu0 %18  ;;  %vm47_vm1 = vcmp.eq.s32.totalorder %v40_v8, %v43_v9 }
  0x77   :  { %v23_v11 = vsub.f32 %v12_v0, %v19_v10 }
  0x79   :  { %v25_v12 = vmul.f32 1.442695, %v23_v11  ;;  %v49_v13 = vsel %vm47_vm1, %v23_v11, 0.0 }
  0x7a   :  { %v51_v14 = vsel %vm16_vm0, %v49_v13, 0.0 }
  0x7b   :  { %107 = vpow2.f32 %v25_v12  ;;  %52 = vadd.xlane.f32.xlu0 %v51_v14 }
  0x7d   :  { %v46_v15 = vpop.permute.xlu1 %45 }
  0x7e   :  { %v22_v16 = vpop.xlane.xlu0 %21  ;;  %vm48_vm2 = vcmp.eq.s32.totalorder %v40_v8, %v46_v15 }
  0x7f   :  { %v24_v17 = vsub.f32 %v13_v4, %v22_v16 }
  0x81   :  { %v108_v18 = vpop.eup %107  ;;  %v27_v19 = vmul.f32 1.442695, %v24_v17  ;;  %v50_v20 = vsel %vm48_vm2, %v24_v17, 0.0 }
  0x82   :  { %v29_v21 = vsel %vm16_vm0, %v108_v18, 0.0  ;;  %v54_v22 = vsel %vm16_vm0, %v50_v20, 0.0 }
  0x83   :  { %109 = vpow2.f32 %v27_v19  ;;  %30 = vadd.xlane.f32.xlu2 %v29_v21  ;;  %55 = vadd.xlane.f32.xlu1 %v54_v22 }
  0x89   :  { %v110_v23 = vpop.eup %109 }
  0x8a   :  { %v32_v24 = vsel %vm16_vm0, %v110_v23, 0.0 }
  0x8b   :  { %33 = vadd.xlane.f32.xlu2 %v32_v24 }
  0xee   :  { %v53_v29 = vpop.xlane.xlu0 %52 }
  0xf6   :  { %v31_v25 = vpop.xlane.xlu2 %30  ;;  %v56_v36 = vpop.xlane.xlu1 %55 }
  0xf7   :  { %111 = vlog2.f32 %v31_v25 }
  0xfd   :  { %v112_v26 = vpop.eup %111 }
  0xfe   :  { %v34_v27 = vpop.xlane.xlu2 %33  ;;  %v36_v28 = vmul.f32 0.6931472, %v112_v26 }
  0xff   :  { %113 = vlog2.f32 %v34_v27 }
 0x100   :  { %v57_v30 = vsub.f32 %v36_v28, %v53_v29 }
 0x102   :  { %v65_v38 = vmul.f32 %v98_v33, %v57_v30 }
 0x104   :  { %v68_v40 = vsel %vm67_vm5, %v65_v38, 0.0 }
 0x105   :  { %v114_v31 = vpop.eup %113 }
 0x106   :  { %v38_v34 = vmul.f32 0.6931472, %v114_v31 }
 0x108   :  { %v58_v37 = vsub.f32 %v38_v34, %v56_v36 }
 0x10a   :  { %v66_v39 = vmul.f32 %v99_v35, %v58_v37 }
 0x10c   :  { %v69_v41 = vsel %vm67_vm5, %v66_v39, 0.0 }
 0x10d   :  { %v70_v42 = vadd.f32 %v69_v41, %v68_v40 }
 0x10f   :  { %71 = vadd.xlane.f32.xlu2 %v70_v42 }
 0x182   :  { %v72_v43 = vpop.xlane.xlu2 %71 }
 0x183   :  { %v73_v44 = vrot.slane %v72_v43, 4 }
 0x185   :  { %v74_v45 = vadd.f32 %v73_v44, %v72_v43 }
 0x187   :  { %v75_v46 = vrot.slane %v74_v45, 2 }
 0x189   :  { %v76_v47 = vadd.f32 %v75_v46, %v74_v45 }
 0x18b   :  { %v77_v48 = vrot.slane %v76_v47, 1 }
 0x18d   :  { %v78_v49 = vadd.f32 %v77_v48, %v76_v47 }
 0x18f   :  { %100 = vpush %v78_v49 }
 0x1c0   :  { %s101_s20 = spop %100 }
 0x1c1   :  { %v80_v50 = vstv %s101_s20 }
 0x1c2   :  { %81 = vst [vmem:[#allocation2] sm:$0xff] %v80_v50 }
 0x1c3   :  { %92 = dma.vmem_to_hbm [thread:$0]  %s88_s1, 128, %s90_s19, [#allocation3]  }
 0x1c4   :  { %139 = dma.done.wait [#allocation3], 128  }
 0x1c5   :  { %140 = vsyncadd [#allocation3], 4294967168 }
 0x1c6   :  { %97 = vsyncpa [#allocation3], 1 }

</bundles_post_ra>
